<compile_context>
chip_gen: v7x
topology: tpu7x:2x2x1
jax: 0.10.0
libtpu: 0.0.40
codegen_flags: <defaults>
</compile_context>

<pallas_src>
import functools

import jax
import jax.numpy as jnp
from jax.experimental import pallas as pl
from jax.experimental.pallas import tpu as pltpu


def _round_up(a, m):
    return ((a + m - 1) // m) * m


def look_around(x, backward, pad_value=0.0):
    """JAX port of look_around(x, backward, forward=0, dim=2) for the reference."""
    B, T, D = x.shape
    padded = jnp.pad(x, ((0, 0), (backward, 0), (0, 0)), constant_values=pad_value)
    parts = [padded[:, ind:ind + T, :] for ind in range(backward + 1)]
    return jnp.concatenate(parts, axis=2)


def _mlp_prev_kernel(xc_ref, xp_ref, w1_ref, b1_ref, w2_ref, b2_ref, o_ref, ext_ref,
                     *, n_prev, xprows):
    # xc_ref : (1, tm, D)        current rows of batch b
    # xp_ref : (1, xprows, D)    rows immediately before this tile (same batch)
    # w1_ref : (D*(n_prev+1), H) bf16, c_fc weight, (in x out) layout
    # b1_ref : (1, H)            f32
    # w2_ref : (H, Dout)         bf16, c_proj weight, (in x out) layout
    # b2_ref : (1, Dout)         f32
    # o_ref  : (1, tm, Dout)
    # ext_ref: (xprows + tm, D)  f32 VMEM scratch holding [halo ; current tile]
    i = pl.program_id(1)
    tm = xc_ref.shape[1]
    d = xc_ref.shape[2]

    # Halo rows: the xprows rows just before this tile.  For the first tile of
    # every batch the look-back is out of range -> zeros (look_around pad_value=0).
    halo = xp_ref[0].astype(jnp.float32)
    halo = jnp.where(i > 0, halo, jnp.zeros_like(halo))
    ext_ref[0:xprows, :] = halo
    ext_ref[xprows:xprows + tm, :] = xc_ref[0].astype(jnp.float32)

    # c_fc fused with look_around:  h[t] = b1 + sum_j x[t - n_prev + j] @ W1_j
    acc = jnp.zeros((tm, w1_ref.shape[1]), jnp.float32)
    for j in range(n_prev + 1):
        off = xprows - n_prev + j
        xj = ext_ref[off:off + tm, :].astype(jnp.bfloat16)      # bf16 at MXU boundary
        wj = w1_ref[j * d:(j + 1) * d, :]
        acc = acc + jnp.dot(xj, wj, preferred_element_type=jnp.float32)
    h = acc + b1_ref[...].astype(jnp.float32)

    # GELU with tanh approximation (matches nn.GELU(approximate='tanh')), in f32.
    c = 0.7978845608028654  # sqrt(2/pi)
    g = 0.5 * h * (1.0 + jnp.tanh(c * (h + 0.044715 * h * h * h)))

    # c_proj, bf16 operands, f32 accumulation.
    out = jnp.dot(g.astype(w2_ref.dtype), w2_ref[...],
                  preferred_element_type=jnp.float32) + b2_ref[...].astype(jnp.float32)
    o_ref[0] = out.astype(o_ref.dtype)


def mlp_prev_pallas(x, w1, b1, w2, b2, n_prev, *, tm=512):
    """x: (B, T, D). w1: (H, D*(n_prev+1)) torch layout, b1: (H,),
    w2: (D, H), b2: (D,). Returns (B, T, D)."""
    B, T, D = x.shape
    H = w1.shape[0]
    Dout = w2.shape[0]
    assert w1.shape[1] == D * (n_prev + 1)
    assert w2.shape[1] == H

    # Halo block: a multiple of 16 sublanes that covers the n_prev look-back rows.
    xprows = max(16, _round_up(n_prev, 16))
    # Row tile: large for MXU / pipeline efficiency, clamped for short sequences.
    tm_eff = min(_round_up(tm, xprows), _round_up(T, xprows))
    T_pad = _round_up(T, tm_eff)
    assert tm_eff % xprows == 0

    x_in = x
    if T_pad != T:
        # Trailing zero rows per batch; their outputs are discarded and, since the
        # window is backward-only, they never influence real rows.
        x_in = jnp.pad(x, ((0, 0), (0, T_pad - T), (0, 0)))
    n_tiles = T_pad // tm_eff
    xp_blocks_per_tile = tm_eff // xprows

    # Weights: torch (out, in) -> (in, out); cast to bf16 for the MXU.
    w1t = w1.T.astype(jnp.bfloat16)                  # (D*(n_prev+1), H)
    w2t = w2.T.astype(jnp.bfloat16)                  # (H, Dout)
    b1r = b1.reshape(1, H).astype(jnp.float32)
    b2r = b2.reshape(1, Dout).astype(jnp.float32)

    kernel = functools.partial(_mlp_prev_kernel, n_prev=n_prev, xprows=xprows)

    itemsize = x.dtype.itemsize
    flops = 2 * B * T_pad * (D * (n_prev + 1) * H + H * Dout)
    bytes_accessed = (x_in.size * itemsize          # activations read (once, fused)
                      + w1t.size * 2 + w2t.size * 2  # bf16 weights
                      + (b1r.size + b2r.size) * 4
                      + B * T_pad * Dout * itemsize)  # output
    cost = pl.CostEstimate(flops=flops,
                           transcendentals=B * T_pad * H,
                           bytes_accessed=bytes_accessed)

    out = pl.pallas_call(
        kernel,
        out_shape=jax.ShapeDtypeStruct((B, T_pad, Dout), x.dtype),
        grid_spec=pltpu.PrefetchScalarGridSpec(
            num_scalar_prefetch=0,
            grid=(B, n_tiles),
            in_specs=[
                # current tile of activations
                pl.BlockSpec((1, tm_eff, D), lambda b, i: (b, i, 0)),
                # halo: the xprows rows immediately before the tile (clamped to
                # block 0 for the first tile; zeroed inside the kernel)
                pl.BlockSpec((1, xprows, D),
                             lambda b, i: (b, jnp.maximum(i * xp_blocks_per_tile - 1, 0), 0)),
                pl.BlockSpec((D * (n_prev + 1), H), lambda b, i: (0, 0)),  # w1 (resident)
                pl.BlockSpec((1, H), lambda b, i: (0, 0)),                 # b1
                pl.BlockSpec((H, Dout), lambda b, i: (0, 0)),              # w2 (resident)
                pl.BlockSpec((1, Dout), lambda b, i: (0, 0)),              # b2
            ],
            out_specs=pl.BlockSpec((1, tm_eff, Dout), lambda b, i: (b, i, 0)),
            scratch_shapes=[pltpu.VMEM((xprows + tm_eff, D), jnp.float32)],
        ),
        compiler_params=pltpu.CompilerParams(
            dimension_semantics=("parallel", "parallel"),
            vmem_limit_bytes=32 * 1024 * 1024,
        ),
        cost_estimate=cost,
    )(x_in, x_in, w1t, b1r, w2t, b2r)

    return out[:, :T, :]


def mlp_prev_reference(x, w1, b1, w2, b2, n_prev):
    """Pure-JAX (f32) reference matching the PyTorch forward."""
    x_la = look_around(x, backward=n_prev)
    h = x_la @ w1.T + b1
    c = 0.7978845608028654
    g = 0.5 * h * (1.0 + jnp.tanh(c * (h + 0.044715 * h ** 3)))
    return g @ w2.T + b2


if __name__ == "__main__":
    # Small config consistent with the module:
    #   n_embd = 32, n_prev = 2, mlp_ratio = 4
    n_embd, n_prev, mlp_ratio = 32, 2, 4
    Din = n_embd * (n_prev + 1)
    H = mlp_ratio * n_embd

    key = jax.random.PRNGKey(0)
    kx, k1, k2, k3, k4, kx2 = jax.random.split(key, 6)

    # Torch Linear layout: (out_features, in_features)
    w1 = jax.random.normal(k1, (H, Din), dtype=jnp.float32) * 0.02
    b1 = jax.random.normal(k2, (H,), dtype=jnp.float32) * 0.02
    w2 = jax.random.normal(k3, (n_embd, H), dtype=jnp.float32) * 0.02
    b2 = jax.random.normal(k4, (n_embd,), dtype=jnp.float32) * 0.02

    # Test 1: tiny sequence (single tile, exercises the t<0 zero-pad path).
    B, T = 2, 8
    x = jax.random.normal(kx, (B, T, n_embd), dtype=jnp.float32)
    out = jax.block_until_ready(mlp_prev_pallas(x, w1, b1, w2, b2, n_prev))
    ref = mlp_prev_reference(x, w1, b1, w2, b2, n_prev)
    assert out.shape == (B, T, n_embd)
    assert jnp.allclose(out, ref, atol=5e-3, rtol=5e-2), \
        f"mismatch vs reference (test 1): max abs diff {jnp.max(jnp.abs(out - ref))}"

    # Test 2: multiple row tiles + ragged T (exercises the cross-tile halo path
    # and the trailing-pad path) using a small explicit tile.
    B2, T2 = 2, 80
    x2 = jax.random.normal(kx2, (B2, T2, n_embd), dtype=jnp.float32)
    out2 = jax.block_until_ready(mlp_prev_pallas(x2, w1, b1, w2, b2, n_prev, tm=32))
    ref2 = mlp_prev_reference(x2, w1, b1, w2, b2, n_prev)
    assert out2.shape == (B2, T2, n_embd)
    assert jnp.allclose(out2, ref2, atol=5e-3, rtol=5e-2), \
        f"mismatch vs reference (test 2): max abs diff {jnp.max(jnp.abs(out2 - ref2))}"

    print("KERNEL_OK")
</pallas_src>

<mosaic_0001>
module attributes {stable_mosaic.version = 11 : i64} {
  func.func @_mlp_prev_kernel(%arg0: i32, %arg1: i32, %arg2: memref<1x16x32xf32, #tpu.memory_space<vmem>>, %arg3: memref<1x16x32xf32, #tpu.memory_space<vmem>>, %arg4: memref<96x128xbf16, #tpu.memory_space<vmem>>, %arg5: memref<1x128xf32, #tpu.memory_space<vmem>>, %arg6: memref<128x32xbf16, #tpu.memory_space<vmem>>, %arg7: memref<1x32xf32, #tpu.memory_space<vmem>>, %arg8: memref<1x16x32xf32, #tpu.memory_space<vmem>>, %arg9: memref<32x32xf32, #tpu.memory_space<vmem>>) attributes {dimension_semantics = [#tpu.dimension_semantics<parallel>, #tpu.dimension_semantics<parallel>], iteration_bounds = array<i64: 2, 1>, scalar_prefetch = 0 : i64, scratch_operands = 1 : i64, tpu.core_type = #tpu.core_type<tc>, window_params = [{transform_indices = @transform_0, window_bounds = array<i64: 1, 16, 32>}, {transform_indices = @transform_1, window_bounds = array<i64: 1, 16, 32>}, {pipeline_mode = #tpu.pipeline_mode<synchronous>, transform_indices = @transform_2, window_bounds = array<i64: 96, 128>}, {pipeline_mode = #tpu.pipeline_mode<synchronous>, transform_indices = @transform_3, window_bounds = array<i64: 1, 128>}, {pipeline_mode = #tpu.pipeline_mode<synchronous>, transform_indices = @transform_4, window_bounds = array<i64: 128, 32>}, {pipeline_mode = #tpu.pipeline_mode<synchronous>, transform_indices = @transform_5, window_bounds = array<i64: 1, 32>}, {transform_indices = @transform_6, window_bounds = array<i64: 1, 16, 32>}]} {
    %c0 = arith.constant 0 : index
    %c0_0 = arith.constant 0 : index
    %c0_1 = arith.constant 0 : index
    %0 = vector.load %arg3[%c0, %c0_0, %c0_1] : memref<1x16x32xf32, #tpu.memory_space<vmem>>, vector<1x16x32xf32>
    %1 = vector.shape_cast %0 : vector<1x16x32xf32> to vector<16x32xf32>
    %c0_i32 = arith.constant 0 : i32
    %2 = arith.cmpi sgt, %arg1, %c0_i32 : i32
    %cst = arith.constant 0.000000e+00 : f32
    %3 = vector.broadcast %cst : f32 to vector<16x32xf32>
    %4 = arith.select %2, %1, %3 : vector<16x32xf32>
    %c0_2 = arith.constant 0 : index
    %c0_3 = arith.constant 0 : index
    %5 = vector.load %arg9[%c0_2, %c0_3] : memref<32x32xf32, #tpu.memory_space<vmem>>, vector<16x32xf32>
    tpu.vector_store %arg9[%c0_2, %c0_3], %4 {strides = array<i32>} : memref<32x32xf32, #tpu.memory_space<vmem>>, vector<16x32xf32>,
    %c0_4 = arith.constant 0 : index
    %c0_5 = arith.constant 0 : index
    %c0_6 = arith.constant 0 : index
    %6 = vector.load %arg2[%c0_4, %c0_5, %c0_6] : memref<1x16x32xf32, #tpu.memory_space<vmem>>, vector<1x16x32xf32>
    %7 = vector.shape_cast %6 : vector<1x16x32xf32> to vector<16x32xf32>
    %c16 = arith.constant 16 : index
    %c0_7 = arith.constant 0 : index
    %8 = vector.load %arg9[%c16, %c0_7] : memref<32x32xf32, #tpu.memory_space<vmem>>, vector<16x32xf32>
    tpu.vector_store %arg9[%c16, %c0_7], %7 {strides = array<i32>} : memref<32x32xf32, #tpu.memory_space<vmem>>, vector<16x32xf32>,
    %cst_8 = arith.constant 0.000000e+00 : f32
    %9 = vector.broadcast %cst_8 : f32 to vector<16x128xf32>
    %c14 = arith.constant 14 : index
    %c0_9 = arith.constant 0 : index
    %10 = vector.load %arg9[%c14, %c0_9] : memref<32x32xf32, #tpu.memory_space<vmem>>, vector<16x32xf32>
    %11 = arith.truncf %10 : vector<16x32xf32> to vector<16x32xbf16>
    %c0_10 = arith.constant 0 : index
    %c0_11 = arith.constant 0 : index
    %12 = vector.load %arg4[%c0_10, %c0_11] : memref<96x128xbf16, #tpu.memory_space<vmem>>, vector<32x128xbf16>
    %cst_12 = arith.constant dense<0.000000e+00> : vector<16x128xf32>
    %13 = tpu.matmul %11, %12, %cst_12 {dimension_numbers = #tpu.dot_dimension_numbers<[1], [0], [0], [1], [0, 0, 1, 1], [], []>} : vector<16x32xbf16>, vector<32x128xbf16>, vector<16x128xf32> -> vector<16x128xf32>
    %14 = arith.addf %9, %13 : vector<16x128xf32>
    %c15 = arith.constant 15 : index
    %c0_13 = arith.constant 0 : index
    %15 = vector.load %arg9[%c15, %c0_13] : memref<32x32xf32, #tpu.memory_space<vmem>>, vector<16x32xf32>
    %16 = arith.truncf %15 : vector<16x32xf32> to vector<16x32xbf16>
    %c32 = arith.constant 32 : index
    %c0_14 = arith.constant 0 : index
    %17 = vector.load %arg4[%c32, %c0_14] : memref<96x128xbf16, #tpu.memory_space<vmem>>, vector<32x128xbf16>
    %cst_15 = arith.constant dense<0.000000e+00> : vector<16x128xf32>
    %18 = tpu.matmul %16, %17, %cst_15 {dimension_numbers = #tpu.dot_dimension_numbers<[1], [0], [0], [1], [0, 0, 1, 1], [], []>} : vector<16x32xbf16>, vector<32x128xbf16>, vector<16x128xf32> -> vector<16x128xf32>
    %19 = arith.addf %14, %18 : vector<16x128xf32>
    %c16_16 = arith.constant 16 : index
    %c0_17 = arith.constant 0 : index
    %20 = vector.load %arg9[%c16_16, %c0_17] : memref<32x32xf32, #tpu.memory_space<vmem>>, vector<16x32xf32>
    %21 = arith.truncf %20 : vector<16x32xf32> to vector<16x32xbf16>
    %c64 = arith.constant 64 : index
    %c0_18 = arith.constant 0 : index
    %22 = vector.load %arg4[%c64, %c0_18] : memref<96x128xbf16, #tpu.memory_space<vmem>>, vector<32x128xbf16>
    %cst_19 = arith.constant dense<0.000000e+00> : vector<16x128xf32>
    %23 = tpu.matmul %21, %22, %cst_19 {dimension_numbers = #tpu.dot_dimension_numbers<[1], [0], [0], [1], [0, 0, 1, 1], [], []>} : vector<16x32xbf16>, vector<32x128xbf16>, vector<16x128xf32> -> vector<16x128xf32>
    %24 = arith.addf %19, %23 : vector<16x128xf32>
    %c0_20 = arith.constant 0 : index
    %c0_21 = arith.constant 0 : index
    %25 = vector.load %arg5[%c0_20, %c0_21] : memref<1x128xf32, #tpu.memory_space<vmem>>, vector<1x128xf32>
    %26 = vector.broadcast %25 : vector<1x128xf32> to vector<16x128xf32>
    %27 = arith.addf %24, %26 : vector<16x128xf32>
    %cst_22 = arith.constant 5.000000e-01 : f32
    %28 = vector.broadcast %cst_22 : f32 to vector<16x128xf32>
    %29 = arith.mulf %28, %27 : vector<16x128xf32>
    %cst_23 = arith.constant 4.471500e-02 : f32
    %30 = vector.broadcast %cst_23 : f32 to vector<16x128xf32>
    %31 = arith.mulf %30, %27 : vector<16x128xf32>
    %32 = arith.mulf %31, %27 : vector<16x128xf32>
    %33 = arith.mulf %32, %27 : vector<16x128xf32>
    %34 = arith.addf %27, %33 : vector<16x128xf32>
    %cst_24 = arith.constant 0.797884583 : f32
    %35 = vector.broadcast %cst_24 : f32 to vector<16x128xf32>
    %36 = arith.mulf %35, %34 : vector<16x128xf32>
    %37 = math.tanh %36 : vector<16x128xf32>
    %cst_25 = arith.constant 1.000000e+00 : f32
    %38 = vector.broadcast %cst_25 : f32 to vector<16x128xf32>
    %39 = arith.addf %38, %37 : vector<16x128xf32>
    %40 = arith.mulf %29, %39 : vector<16x128xf32>
    %41 = arith.truncf %40 : vector<16x128xf32> to vector<16x128xbf16>
    %c0_26 = arith.constant 0 : index
    %c0_27 = arith.constant 0 : index
    %42 = vector.load %arg6[%c0_26, %c0_27] : memref<128x32xbf16, #tpu.memory_space<vmem>>, vector<128x32xbf16>
    %cst_28 = arith.constant dense<0.000000e+00> : vector<16x32xf32>
    %43 = tpu.matmul %41, %42, %cst_28 {dimension_numbers = #tpu.dot_dimension_numbers<[1], [0], [0], [1], [0, 0, 1, 1], [], []>} : vector<16x128xbf16>, vector<128x32xbf16>, vector<16x32xf32> -> vector<16x32xf32>
    %c0_29 = arith.constant 0 : index
    %c0_30 = arith.constant 0 : index
    %44 = vector.load %arg7[%c0_29, %c0_30] : memref<1x32xf32, #tpu.memory_space<vmem>>, vector<1x32xf32>
    %45 = vector.broadcast %44 : vector<1x32xf32> to vector<16x32xf32>
    %46 = arith.addf %43, %45 : vector<16x32xf32>
    %c0_31 = arith.constant 0 : index
    %c0_32 = arith.constant 0 : index
    %c0_33 = arith.constant 0 : index
    %47 = vector.load %arg8[%c0_31, %c0_32, %c0_33] : memref<1x16x32xf32, #tpu.memory_space<vmem>>, vector<1x16x32xf32>
    %48 = vector.shape_cast %47 : vector<1x16x32xf32> to vector<16x32xf32>
    %49 = vector.shape_cast %46 : vector<16x32xf32> to vector<1x16x32xf32>
    tpu.vector_store %arg8[%c0_31, %c0_32, %c0_33], %49 {strides = array<i32>} : memref<1x16x32xf32, #tpu.memory_space<vmem>>, vector<1x16x32xf32>,
    return
  }
  func.func @transform_0(%arg0: i32, %arg1: i32) -> (i32, i32, i32) {
    %c0_i32 = arith.constant 0 : i32
    %c0_i32_0 = arith.constant 0 : i32
    return %arg0, %arg1, %c0_i32 : i32, i32, i32
  }
  func.func @transform_1(%arg0: i32, %arg1: i32) -> (i32, i32, i32) {
    %c1_i32 = arith.constant 1 : i32
    %0 = arith.muli %arg1, %c1_i32 : i32
    %c1_i32_0 = arith.constant 1 : i32
    %1 = arith.subi %0, %c1_i32_0 : i32
    %c0_i32 = arith.constant 0 : i32
    %2 = arith.maxsi %1, %c0_i32 : i32
    %c0_i32_1 = arith.constant 0 : i32
    %c0_i32_2 = arith.constant 0 : i32
    return %arg0, %2, %c0_i32_1 : i32, i32, i32
  }
  func.func @transform_2(%arg0: i32, %arg1: i32) -> (i32, i32) {
    %c0_i32 = arith.constant 0 : i32
    %c0_i32_0 = arith.constant 0 : i32
    %c0_i32_1 = arith.constant 0 : i32
    return %c0_i32, %c0_i32_0 : i32, i32
  }
  func.func @transform_3(%arg0: i32, %arg1: i32) -> (i32, i32) {
    %c0_i32 = arith.constant 0 : i32
    %c0_i32_0 = arith.constant 0 : i32
    %c0_i32_1 = arith.constant 0 : i32
    return %c0_i32, %c0_i32_0 : i32, i32
  }
  func.func @transform_4(%arg0: i32, %arg1: i32) -> (i32, i32) {
    %c0_i32 = arith.constant 0 : i32
    %c0_i32_0 = arith.constant 0 : i32
    %c0_i32_1 = arith.constant 0 : i32
    return %c0_i32, %c0_i32_0 : i32, i32
  }
  func.func @transform_5(%arg0: i32, %arg1: i32) -> (i32, i32) {
    %c0_i32 = arith.constant 0 : i32
    %c0_i32_0 = arith.constant 0 : i32
    %c0_i32_1 = arith.constant 0 : i32
    return %c0_i32, %c0_i32_0 : i32, i32
  }
  func.func @transform_6(%arg0: i32, %arg1: i32) -> (i32, i32, i32) {
    %c0_i32 = arith.constant 0 : i32
    %c0_i32_0 = arith.constant 0 : i32
    return %arg0, %arg1, %c0_i32 : i32, i32, i32
  }
}

</mosaic_0001>

<bundles_post_ra>
// kernel: tpu_custom_call.1
= control target key start
LH: loop header
LB: loop body
LE: loop exit
PB: predicated region body
PF: predicated region fallthrough
CT: control target
= control target key end

     0   :  { %11 = vsyncpa [#allocation4], 0  ;;  %s1411_s0 = inlined_call_operand.vmem [shape: f32[2,16,32], index: 0, kind: input, shape index: {}]   ;;  %s1412_s1 = inlined_call_operand.hbm [shape: f32[2,16,32], index: 1, kind: input, shape index: {}]   ;;  %s1413_s2 = inlined_call_operand.vmem [shape: bf16[96,128], index: 2, kind: input, shape index: {}]   ;;  %s1414_s3 = inlined_call_operand.vmem [shape: f32[1,128], index: 3, kind: input, shape index: {}]   ;;  %s1415_s4 = inlined_call_operand.vmem [shape: bf16[128,32], index: 4, kind: input, shape index: {}]   ;;  %s1416_s5 = inlined_call_operand.vmem [shape: f32[1,32], index: 5, kind: input, shape index: {}]   ;;  %s1417_s6 = inlined_call_operand.hbm [shape: f32[2,16,32], index: 6, kind: output, shape index: {}]  }
   0x1   :  { %13 = vsyncpa [#allocation4 + $0x1], 0 }
   0x2   :  { %14 = vsyncpa [#allocation5], 0 }
   0x3   :  { %16 = vsyncpa [#allocation5 + $0x1], 0  ;;  %s1152_s21 = smov 0   ;;  %s1154_s22 = smov 0  }
   0x4   :  { %s1156_s23 = smov 0   ;;  %s1158_s24 = smov 0  }
   0x5   :  { %s1160_s25 = smov 0   ;;  %s1162_s26 = smov 0  }
   0x6 LB: > { %s808_s27 = sadd.s32 4294967295, %s1107_s26   ;;  %s809_s28 = sadd.s32 4294967294, %s1107_s26   ;;  %s1107_s26 = sphi %s1162_s26, %s22_s26   ;;  %s1103_s25 = sphi %s1160_s25, %s1432_s25   ;;  %s1099_s24 = sphi %s1158_s24, %s1431_s24   ;;  %s1095_s23 = sphi %s1156_s23, %s1430_s23   ;;  %s1091_s22 = sphi %s1154_s22, %s1429_s22   ;;  %s1087_s21 = sphi %s1152_s21, %s1428_s21  }
   0x7   : > { %s34_s29 = sadd.s32 1, %s1103_s25  ;;  %s77_s30 = sadd.s32 1, %s1095_s23 }
   0x8   : > { %p36_p0 = scmp.ge.s32.totalorder %s34_s29, 2  ;;  %p84_p1 = scmp.ne.s32.totalorder %s1095_s23, %s1091_s22 }
   0x9   : > { %p85_p2 = scmp.eq.s32.totalorder %s1107_s26, 0  ;;  %p90_p3 = scmp.ne.s32.totalorder %s1091_s22, %s1087_s21 }
   0xa   : > { %s1434_s29 = smov (%p36_p0, %s34_s29), 0  ;;  %p91_p5 = scmp.eq.s32.totalorder %s808_s27, 0 }
   0xb   : > { %p1193_p4 = por %p85_p2, %p84_p1  ;;  %s72_s8 = ssub.s32 %s1103_s25, %s1434_s29 }
   0xc   : > { %p200_p6 = scmp.eq.s32.totalorder %s808_s27, 1  ;;  %p75_p7 = scmp.eq.s32.totalorder %s72_s8, 0 }
   0xd   : > { %p1199_p8 = por %p91_p5, %p90_p3  ;;  %p206_p10 = scmp.eq.s32.totalorder %s809_s28, 1 }
   0xe   : > { %p1203_p9 = por %p200_p6, %p84_p1  ;;  %p921_p13 = scmp.lt.s32.totalorder %s1107_s26, 2 }
   0xf   : > { %s1208_s11 = scalar_select %p75_p7, %s1095_s23, %s77_s30  }
  0x10   : > { %s1421_s10 = scalar_select %p1203_p9, 1, 0 }
  0x11   : > { %p1210_p11 = por %p206_p10, %p90_p3  ;;  %s251_s13 = sand.u32 1, %s1095_s23  }
  0x12   : > { %s812_s14 = sshll.u32 %s251_s13, 4  ;;  %s844_s15 = sshll.u32 %s1103_s25, 8 }
  0x13   : > { %s1422_s12 = scalar_select %p1210_p11, 1, 0 }
  0x14   : > { %s1221_s18 = scalar_lea.hbm %s1412_s1, %s844_s15  ;;  %s255_s19 = scalar_lea.vmem [#allocation3], %s812_s14 }
  0x15   : > { %s267_s20 = sshll.u32 %s255_s19, 4  ;;  %p1227_p0 = pnand %p921_p13, %p1193_p4  ;;  %s1223_s20 = int_to_ptr.vmem [resolvable:$true] %s267_s20 }
  0x16   : > { %s1232_s28 = scalar_lea.sflag [#allocation4], %s251_s13  ;;  %s995_s30 = scalar_lea.hbm %s1221_s18, 256 }
  0x17   : > { %p996_p2 = scmp.ne.s32.totalorder %s1221_s18, %s995_s30  ;;  %p997_p3 = pneg %p1227_p0 }
  0x18   : > { %s1000_s7 = scalar_lea.hbm %s1412_s1, 512  ;;  %p1001_p4 = scmp.lt.u32.totalorder %s1221_s18, %s1412_s1 }
  0x19   : > { %p998_p5 = pnand %p997_p3, %p996_p2  ;;  %p1002_p7 = scmp.lt.u32.totalorder %s1000_s7, %s995_s30 }
  0x1a   : > { %p1004_p13 = scmp.lt.u32.totalorder %s995_s30, %s1221_s18 }
  0x1b   : > { %p999_p6 = pneg %p998_p5  ;;  %p1003_p10 = por %p1002_p7, %p1001_p4 }
  0x1d   : > { %p1005_p12 = por %p1004_p13, %p1003_p10 }
  0x1f   : > { %p1006_p1 = pnand %p1005_p12, %p999_p6 }
  0x21   : > { %1009 = shalt.err (!%p1006_p1)
}
  0x22   : > { %s1010_s13 = scalar_lea.vmem %s1223_s20, 256  ;;  %s1109_s17 = smov [#allocation3]  }
  0x23   : > { %p1011_p2 = scmp.ne.s32.totalorder %s1223_s20, %s1010_s13  ;;  %s1015_s19 = sshll.u32 %s1109_s17, 4  ;;  %s1016_s19 = int_to_ptr.vmem [resolvable:$false] %s1015_s19 }
  0x24   : > { %s1017_s8 = scalar_lea.vmem %s1016_s19, 512  ;;  %p1018_p9 = scmp.lt.s32.totalorder %s1223_s20, %s1016_s19 }
  0x25   : > { %p1013_p5 = pnand %p1011_p2, %p997_p3  ;;  %p1019_p4 = scmp.lt.s32.totalorder %s1017_s8, %s1010_s13 }
  0x27   : > { %p1014_p11 = pneg %p1013_p5  ;;  %p1020_p7 = por %p1019_p4, %p1018_p9 }
  0x29   : > { %p1021_p10 = pnand %p1020_p7, %p1014_p11 }
  0x2b   : > { %1024 = shalt.err (!%p1021_p10)
}
  0x2c   : > { %s1110_s30 = smov 128   ;;  %s1111_s14 = smov 8  }
  0x2d   : > { %916 = dma.hbm_to_vmem [thread:$0]  (!%p1227_p0), %s1221_s18, 256, %s1223_s20, %s1232_s28, %s1110_s30, %s1110_s30, %s1111_s14  }
  0x2e   : > { %p275_p12 = scmp.lt.s32.totalorder %s1107_s26, 3  ;;  %p1424_p1 = scmp.ge.s32.totalorder %s1107_s26, 1 }
  0x30   : > { %p276_p3 = pnand %p1424_p1, %p275_p12 }
  0x31   : > { %s1264_s7 = sand.u32 (!%p276_p3), 1, %s1091_s22  }
  0x32   : > { %279 = sbr.rel (%p276_p3) target bundleno = 567 (0x237), region = 44  ;;  %s282_s15 = scalar_lea.sflag (!%p276_p3), [#allocation4], %s1264_s7 }
  0x39   : > { %1078 = dma.done.wait (%p1199_p8), %s282_s15, 256  }
  0x3a   : > { %1080 = vsyncadd (%p1199_p8), %s282_s15, 4294967040  ;;  %p324_p9 = scmp.lt.s32.totalorder %s1099_s24, 1  ;;  %vm347_vm0 = vcmask 261120   ;;  %v1112_v0 = vmov 0.0   ;;  %vm1113_vm1 = vmmov 0   ;;  %v977_v1 = vld [vmem:[%s1413_s2 + $0x10] sm:$0xff]  }
  0x3b   : > { %865 = vmatprep.subr.bf16.mxu0 %v1112_v0  ;;  %869 = vmatprep.mubr.msk.bf16.mxu0 %vm1113_vm1, %v1112_v0  ;;  %349 = vst.msk [vmem:[#allocation2 + $0x8] sm:$0xff] %vm347_vm0, %v1112_v0  ;;  %v978_v2 = vld [vmem:[%s1413_s2 + $0x18] sm:$0xff]   ;;  %v979_v7 = vld [vmem:[%s1413_s2] sm:$0xff]   ;;  %v980_v9 = vld [vmem:[%s1413_s2 + $0x8] sm:$0xff]   ;;  %s817_s8 = sshll.u32 %s1264_s7, 4  ;;  %p1425_p11 = scmp.ne.s32.totalorder %s1421_s10, 0 }
  0x3c   : > { %s325_s18 = scalar_select %p324_p9, %s1099_s24, 1  ;;  %889 = vmatprep.subr.bf16.mxu1 %v1112_v0  ;;  %905 = vmatprep.mubr.msk.bf16.mxu1 %vm1113_vm1, %v1112_v0  ;;  %v981_v13 = vld [vmem:[%s1413_s2 + $0x20] sm:$0xff]   ;;  %v982_v14 = vld [vmem:[%s1413_s2 + $0x28] sm:$0xff]   ;;  %v985_v20 = vld [vmem:[%s1415_s4 + $0x10] sm:$0xff]  }
  0x3d   : > { %866 = vmatpush3.bf16.msra.mxu0 %v977_v1  ;;  %v983_v18 = vld [vmem:[%s1415_s4] sm:$0xff]   ;;  %v984_v19 = vld [vmem:[%s1415_s4 + $0x8] sm:$0xff]   ;;  %v986_v21 = vld [vmem:[%s1415_s4 + $0x18] sm:$0xff]   ;;  %s322_s15 = scalar_lea.vmem [#allocation6], %s817_s8  ;;  %s1114_s13 = smov [#allocation6]  }
  0x3e   : > { %s845_s9 = sshll.u32 %s325_s18, 4  ;;  %867 = vmatprep.subr.bf16.mxu0 %v1112_v0  ;;  %890 = vmatpush3.bf16.msra.mxu1 %v983_v18  ;;  %v987_v22 = vld [vmem:[%s1415_s4 + $0x20] sm:$0xff]   ;;  %v988_v23 = vld [vmem:[%s1415_s4 + $0x28] sm:$0xff]   ;;  %v989_v24 = vld [vmem:[%s1415_s4 + $0x30] sm:$0xff]   ;;  %s703_s18 = sshll.u32 %s322_s15, 4  ;;  %s1355_s18 = int_to_ptr.vmem [resolvable:$true] %s703_s18 }
  0x3f   : > { %s331_s28 = scalar_lea.vmem %s1411_s0, %s845_s9  ;;  %891 = vmatprep.subr.bf16.mxu1 %v1112_v0  ;;  %v990_v25 = vld [vmem:[%s1415_s4 + $0x38] sm:$0xff]   ;;  %v829_v37 = vld [vmem:[%s1414_s3] ss:$0 sm:$0xff]  ;;  %s846_s9 = sshll.u32 %s1099_s24, 8 }
  0x40   : > { %v350_v3 = vld [vmem:[%s331_s28] sm:$0xff]  ;;  %v351_v4 = vld [vmem:[%s331_s28 + $0x8] sm:$0xff]  ;;  %s1360_s28 = scalar_lea.hbm %s1417_s6, %s846_s9  ;;  %s688_s24 = scalar_lea.sflag [#allocation5], %s1264_s7 }
  0x41   : > { %352 = vst.msk [vmem:[#allocation2 + $0x10] sm:$0xff] %vm347_vm0, %v350_v3  ;;  %353 = vst.msk [vmem:[#allocation2 + $0x18] sm:$0xff] %vm347_vm0, %v351_v4  ;;  %868 = vmatpush3.bf16.msra.mxu0 %v978_v2  ;;  %s1025_s16 = scalar_lea.vmem %s1355_s18, 256  ;;  %s1029_s17 = sshll.u32 %s1114_s13, 4  ;;  %s1030_s17 = int_to_ptr.vmem [resolvable:$false] %s1029_s17 }
  0x42   : > { %873 = vmatprep.subr.bf16.mxu0 %v1112_v0  ;;  %892 = vmatpush3.bf16.msra.mxu1 %v984_v19  ;;  %p1026_p8 = scmp.ne.s32.totalorder %s1355_s18, %s1025_s16  ;;  %s1031_s19 = scalar_lea.vmem %s1030_s17, 512 }
  0x43   : > { %893 = vmatprep.subr.bf16.mxu1 %v1112_v0  ;;  %p1032_p13 = scmp.lt.s32.totalorder %s1355_s18, %s1030_s17  ;;  %p1033_p2 = scmp.lt.s32.totalorder %s1031_s19, %s1025_s16 }
  0x44   : > { %p1027_p0 = pnand %p1026_p8, %p1425_p11 }
  0x45   : > { %p1034_p5 = por %p1033_p2, %p1032_p13 }
  0x46   : > { %894 = vmatpush3.bf16.msra.mxu1 %v985_v20  ;;  %p1028_p6 = pneg %p1027_p0 }
  0x47   : > { %895 = vmatprep.subr.bf16.mxu1 %v1112_v0 }
  0x48   : > { %v361_v5 = vld [vmem:[#allocation2 + $0xf] sm:$0xff]  ;;  %v362_v6 = vld [vmem:[#allocation2 + $0x17] sm:$0xff]  ;;  %p1035_p4 = pnand %p1034_p5, %p1028_p6 }
  0x49   : > { %v363_v8 = vpack.c.bf16 %v362_v6, %v361_v5  ;;  %v354_v10 = vld [vmem:[#allocation2 + $0xe] sm:$0xff]  ;;  %v355_v11 = vld [vmem:[#allocation2 + $0x16] sm:$0xff] }
  0x4a   : > { %v356_v12 = vpack.c.bf16 %v355_v11, %v354_v10  ;;  %v480_v15 = vld [vmem:[#allocation2 + $0x10] sm:$0xff]  ;;  %v481_v16 = vld [vmem:[#allocation2 + $0x18] sm:$0xff]  ;;  %896 = vmatpush3.bf16.msra.mxu1 %v986_v21 }
  0x4b   : > { %870 = vmatmul.mubr.msk.bf16.vlgmr.msra.gmra.mrb[0].mxu0 %vm347_vm0, %v363_v8  ;;  %v482_v17 = vpack.c.bf16 %v481_v16, %v480_v15  ;;  %897 = vmatprep.subr.bf16.mxu1 %v1112_v0 }
  0x4c   : > { %874 = vmatpush3.bf16.msra.mxu0 %v979_v7  ;;  %877 = vmatprep.mubr.msk.bf16.mxu0 %vm1113_vm1, %v1112_v0 }
  0x4d   : > { %875 = vmatprep.subr.bf16.mxu0 %v1112_v0 }
  0x4e   : > { %898 = vmatpush3.bf16.msra.mxu1 %v987_v22 }
  0x4f   : > { %899 = vmatprep.subr.bf16.mxu1 %v1112_v0 }
  0x50   : > { %876 = vmatpush3.bf16.msra.mxu0 %v980_v9 }
  0x51   : > { %881 = vmatprep.subr.bf16.mxu0 %v1112_v0 }
  0x52   : > { %900 = vmatpush3.bf16.msra.mxu1 %v988_v23 }
  0x53   : > { %878 = vmatmul.mubr.msk.bf16.vlgmr.msra.gmra.mrb[4].mxu0 %vm347_vm0, %v356_v12  ;;  %901 = vmatprep.subr.bf16.mxu1 %v1112_v0 }
  0x54   : > { %882 = vmatpush3.bf16.msra.mxu0 %v981_v13  ;;  %885 = vmatprep.mubr.msk.bf16.mxu0 %vm1113_vm1, %v1112_v0 }
  0x55   : > { %883 = vmatprep.subr.bf16.mxu0 %v1112_v0 }
  0x56   : > { %902 = vmatpush3.bf16.msra.mxu1 %v989_v24 }
  0x57   : > { %903 = vmatprep.subr.bf16.mxu1 %v1112_v0  ;;  %v830_v0 = vld [vmem:[%s1416_s5] ss:$0 sm:$0xff] }
  0x58   : > { %884 = vmatpush3.bf16.msra.mxu0 %v982_v14 }
  0x5a   : > { %904 = vmatpush3.bf16.msra.mxu1 %v990_v25 }
  0x5b   : > { %886 = vmatmul.mubr.msk.bf16.vlgmr.msra.gmra.mrb[8].mxu0 %vm347_vm0, %v482_v17 }
 0x11e   : > { %v417_v26 = vpop.f32.mrb[0].mxu0 }
 0x11f   : > { %v871_v27 = vpop.f32.mrb[1].mxu0 }
 0x120   : > { %v420_v28 = vpop.f32.mrb[2].mxu0 }
 0x121   : > { %v872_v29 = vpop.f32.mrb[3].mxu0 }
 0x126   : > { %v473_v30 = vpop.f32.mrb[4].mxu0 }
 0x127   : > { %v474_v31 = vadd.f32 %v473_v30, %v417_v26  ;;  %v879_v32 = vpop.f32.mrb[5].mxu0 }
 0x128   : > { %v476_v33 = vpop.f32.mrb[6].mxu0 }
 0x129   : > { %v477_v34 = vadd.f32 %v476_v33, %v420_v28  ;;  %v880_v35 = vpop.f32.mrb[7].mxu0 }
 0x12e   : > { %v536_v36 = vpop.f32.mrb[8].mxu0 }
 0x12f   : > { %v543_v38 = vadd.f32 %v536_v36, %v474_v31  ;;  %v887_v39 = vpop.f32.mrb[9].mxu0 }
 0x130   : > { %v539_v40 = vpop.f32.mrb[10].mxu0 }
 0x131   : > { %v552_v41 = vadd.f32 %v829_v37, %v543_v38  ;;  %v544_v42 = vadd.f32 %v539_v40, %v477_v34  ;;  %v888_v43 = vpop.f32.mrb[11].mxu0 }
 0x133   : > { %v556_v44 = vmul.f32 0.044715, %v552_v41  ;;  %v553_v45 = vadd.f32 %v829_v37, %v544_v42  ;;  %v554_v58 = vmul.f32 0.5, %v552_v41 }
 0x135   : > { %v558_v46 = vmul.f32 %v556_v44, %v552_v41  ;;  %v557_v47 = vmul.f32 0.044715, %v553_v45  ;;  %v555_v59 = vmul.f32 0.5, %v553_v45 }
 0x137   : > { %v559_v48 = vmul.f32 %v557_v47, %v553_v45  ;;  %v560_v49 = vmul.f32 %v558_v46, %v552_v41 }
 0x139   : > { %v561_v50 = vmul.f32 %v559_v48, %v553_v45  ;;  %v562_v51 = vadd.f32 %v560_v49, %v552_v41 }
 0x13b   : > { %v563_v52 = vadd.f32 %v561_v50, %v553_v45  ;;  %v564_v53 = vmul.f32 0.7978846, %v562_v51 }
 0x13d   : > { %v565_v54 = vmul.f32 0.7978846, %v563_v52  ;;  %991 = vtanh.f32 %v564_v53 }
 0x13f   : > { %993 = vtanh.f32 %v565_v54 }
 0x147   : > { %v992_v55 = vpop.eup %991 }
 0x148   : > { %v568_v56 = vadd.f32 1.0, %v992_v55 }
 0x149   : > { %v994_v57 = vpop.eup %993 }
 0x14a   : > { %v569_v60 = vadd.f32 1.0, %v994_v57  ;;  %v570_v61 = vmul.f32 %v568_v56, %v554_v58 }
 0x14c   : > { %v571_v62 = vmul.f32 %v569_v60, %v555_v59 }
 0x14e   : > { %v572_v63 = vpack.c.bf16 %v571_v62, %v570_v61 }
 0x150   : > { %906 = vmatmul.mubr.bf16.vlgmr.msra.gmra.mrb[0].mxu1 %v572_v63 }
 0x223   : > { %v678_v1 = vpop.f32.mrb[0].mxu1 }
 0x224   : > { %v679_v2 = vadd.f32 %v830_v0, %v678_v1  ;;  %v907_v3 = vpop.f32.mrb[1].mxu1 }
 0x225   : > { %v681_v4 = vpop.f32.mrb[2].mxu1 }
 0x226   : > { %685 = vst.msk [vmem:[%s322_s15] sm:$0xff] %vm347_vm0, %v679_v2  ;;  %v682_v5 = vadd.f32 %v830_v0, %v681_v4  ;;  %v908_v6 = vpop.f32.mrb[3].mxu1 }
 0x228   : > { %686 = vst.msk [vmem:[%s322_s15 + $0x8] sm:$0xff] %vm347_vm0, %v682_v5 }
 0x229   : > { %1038 = shalt.err (!%p1035_p4)
}
 0x22a   : > { %s1039_s8 = scalar_lea.hbm %s1360_s28, 256  ;;  %s1043_s15 = scalar_lea.hbm %s1417_s6, 512 }
 0x22b   : > { %p1040_p7 = scmp.ne.s32.totalorder %s1360_s28, %s1039_s8  ;;  %p1044_p1 = scmp.lt.u32.totalorder %s1360_s28, %s1417_s6 }
 0x22c   : > { %p1045_p3 = scmp.lt.u32.totalorder %s1043_s15, %s1039_s8  ;;  %p1047_p8 = scmp.lt.u32.totalorder %s1039_s8, %s1360_s28 }
 0x22d   : > { %p1041_p10 = pnand %p1040_p7, %p1425_p11 }
 0x22e   : > { %p1046_p9 = por %p1045_p3, %p1044_p1 }
 0x22f   : > { %p1042_p12 = pneg %p1041_p10 }
 0x230   : > { %p1048_p0 = por %p1047_p8, %p1046_p9 }
 0x232   : > { %p1049_p6 = pnand %p1048_p0, %p1042_p12 }
 0x234   : > { %1052 = shalt.err (!%p1049_p6)
}
 0x235   : > { %s1115_s27 = smov 128   ;;  %s1116_s16 = smov 8  }
 0x236   : > { %911 = dma.vmem_to_hbm [thread:$0]  (%p1425_p11), %s1355_s18, 256, %s1360_s28, %s688_s24, %s1115_s27, %s1115_s27, %s1116_s16  }
 0x237 PF: > { %s718_s13 = sand.u32 1, %s1087_s21   ;;  %p1426_p13 = scmp.ne.s32.totalorder %s1422_s12, 0 }
 0x238   : > { %p1427_p2 = scmp.ge.s32.totalorder %s1107_s26, 2  ;;  %s719_s17 = scalar_lea.sflag [#allocation5], %s718_s13 }
 0x23a   : > { %p918_p5 = pnand %p1427_p2, %p1426_p13 }
 0x23c   : > { %1082 = dma.done.wait (!%p918_p5), %s719_s17, 256  }
 0x23d   : > { %1084 = vsyncadd (!%p918_p5), %s719_s17, 4294967040  ;;  %s22_s26 = sadd.s32 1, %s1107_s26   ;;  %s1428_s21 = smov %s1091_s22 }
 0x23e   : > { %p19_p4 = scmp.ge.s32.totalorder %s22_s26, 4   ;;  %s1429_s22 = smov %s1095_s23 }
 0x23f   : > { %s1430_s23 = smov %s1208_s11  ;;  %s1431_s24 = smov %s1103_s25 }
 0x240   : > { %s1432_s25 = smov %s1434_s29  ;;  %21 = sbr.rel (!%p19_p4) target bundleno = 6 (0x6), region = 92 }
 0x247   :  { %724 = vsyncpa [#allocation4], 1 }
 0x248   :  { %726 = vsyncpa [#allocation4 + $0x1], 1 }
 0x249   :  { %727 = vsyncpa [#allocation5], 1 }
 0x24a   :  { %729 = vsyncpa [#allocation5 + $0x1], 1 }

</bundles_post_ra>
